<compile_context>
chip_gen: v7x
topology: tpu7x:2x2x1
jax: 0.10.0
libtpu: 0.0.40
codegen_flags: <defaults>
</compile_context>

<pallas_src>
import jax
import jax.numpy as jnp
from jax.experimental import pallas as pl
from jax.experimental.pallas import tpu as pltpu


def _round_up(x, m):
    return ((x + m - 1) // m) * m


def _mlp_kernel(x_ref, w1_ref, b1_ref, w2_ref, b2_ref, w3_ref, b3_ref, o_ref):
    """One batch tile: o[1, tb] = sigmoid(relu(relu(x@W1+b1)@W2+b2) . w3 + b3)."""
    mm_dtype = w1_ref.dtype  # f32 or bf16; bf16 is the MXU fast path on v5e/v6e/v7x

    # hidden_1 + ReLU  (MXU matmul, f32 accumulate; elementwise stays f32 —
    # v5e has no bf16 VPU/EUP, so keeping the VPU/EUP math in f32 is v5e-safe).
    x = x_ref[...].astype(mm_dtype)
    h1 = jnp.dot(x, w1_ref[...], preferred_element_type=jnp.float32)
    h1 = jnp.maximum(h1 + b1_ref[...], 0.0)

    # hidden_2 + ReLU
    h2 = jnp.dot(h1.astype(mm_dtype), w2_ref[...],
                 preferred_element_type=jnp.float32)
    h2 = jnp.maximum(h2 + b2_ref[...], 0.0)

    # out_layer (out_features == 1): contract the hidden dim of h2 against the
    # (1, hp) weight row so the batch dim lands on lanes -> lane-dense (1, tb)
    # logits row (the "contract last dims" q@k.T pattern).  This kills the
    # (tb, 1) masked 1-lane stores and 1-lane sigmoid pushes of the old layout.
    logits = jax.lax.dot_general(
        w3_ref[...], h2,
        dimension_numbers=(((1,), (1,)), ((), ())),
        preferred_element_type=jnp.float32)            # (1, tb)
    logits = logits + b3_ref[0, 0]                     # b3 scalar from SMEM
    o_ref[...] = jax.nn.sigmoid(logits).astype(o_ref.dtype)


def prepare_params(w1, b1, w2, b2, w3, b3, *, matmul_dtype=jnp.bfloat16):
    """One-time padding / layout prep (hoisted out of the per-call forward path).

    Weights are (in, out) layout (transpose of torch nn.Linear's weight).  The
    hidden dim is zero-padded to a lane-dense multiple of 128; padded columns
    of W/b are zero so ReLU keeps them at exactly 0 and results are unchanged.
    W1/W2 are stored in `matmul_dtype` (bf16 by default — the MXU is
    bf16-native on all of v5e/v6e/v7x); biases and the final (1, hp) weight row
    stay f32 so accumulation/elementwise accuracy is preserved.
    """
    n_features, n_neurons = w1.shape
    f32 = jnp.float32
    hp = _round_up(n_neurons, 128)
    w1_p = jnp.zeros((n_features, hp), f32).at[:, :n_neurons].set(w1.astype(f32))
    b1_p = jnp.zeros((1, hp), f32).at[:, :n_neurons].set(
        jnp.reshape(b1, (1, -1)).astype(f32))
    w2_p = jnp.zeros((hp, hp), f32).at[:n_neurons, :n_neurons].set(w2.astype(f32))
    b2_p = jnp.zeros((1, hp), f32).at[:, :n_neurons].set(
        jnp.reshape(b2, (1, -1)).astype(f32))
    w3_row = jnp.zeros((1, hp), f32).at[:, :n_neurons].set(
        jnp.reshape(w3, (1, -1)).astype(f32))
    b3_s = jnp.reshape(jnp.asarray(b3, f32), (1, 1))
    return (w1_p.astype(matmul_dtype), b1_p,
            w2_p.astype(matmul_dtype), b2_p,
            w3_row, b3_s)


def net_forward(x, prepared, *, block_batch=4096, vmem_limit_bytes=None):
    """Fused MLP forward: sigmoid(relu(relu(x@W1+b1)@W2+b2)@W3+b3).

    `prepared` is the output of prepare_params().  x is read straight from HBM
    (no wrapper-side pad / cast / slice passes); the batch is tiled by the grid
    and the ragged tail tile is handled by Pallas partial blocks — each output
    row depends only on its own input row, so the masked tail never
    contaminates kept outputs.
    """
    w1_p, b1_p, w2_p, b2_p, w3_row, b3_s = prepared
    batch, n_features = x.shape
    hp = w1_p.shape[1]
    assert w1_p.shape[0] == n_features

    # Batch tile.  Bigger tiles amortize the ~0.35 us fixed grid-step cost; the
    # default (4096 rows -> ~10 MiB of f32 intermediates + resident weights)
    # fits the scoped-VMEM default on every generation (16 MiB v5e, 32 MiB
    # v6e, 32-of-64 MiB v7x).  Sweep upward on v5e/v6e by raising
    # vmem_limit_bytes; cap around 8K-16K rows on v7x (64 MiB physical VMEM).
    if batch <= block_batch:
        tb = batch                                       # single tile, full extent
    else:
        tb = _round_up(min(block_batch, batch), 128)     # lane-dense output tile
    grid = (pl.cdiv(batch, tb),)

    mm_isz = jnp.dtype(w1_p.dtype).itemsize
    cost = pl.CostEstimate(
        flops=2 * batch * (n_features * hp + hp * hp + hp),
        transcendentals=batch,                           # one sigmoid exp per row
        bytes_accessed=(x.size * x.dtype.itemsize
                        + (w1_p.size + w2_p.size) * mm_isz
                        + (b1_p.size + b2_p.size + w3_row.size + b3_s.size) * 4
                        + batch * 4),
    )

    # TODO(synk): mark the five resident operands (constant index_map) with
    # pipeline_mode=pl.Buffered(1) once single-buffered pipeline_mode is
    # verified on this JAX version — frees ~100 KB of VMEM headroom on v7x.
    out = pl.pallas_call(
        _mlp_kernel,
        out_shape=jax.ShapeDtypeStruct((1, batch), jnp.float32),
        grid=grid,
        in_specs=[
            pl.BlockSpec((tb, n_features), lambda i: (i, 0)),   # x: tiled over batch
            pl.BlockSpec((n_features, hp), lambda i: (0, 0)),   # W1: VMEM-resident
            pl.BlockSpec((1, hp), lambda i: (0, 0)),            # b1: resident
            pl.BlockSpec((hp, hp), lambda i: (0, 0)),           # W2: resident
            pl.BlockSpec((1, hp), lambda i: (0, 0)),            # b2: resident
            pl.BlockSpec((1, hp), lambda i: (0, 0)),            # W3 row: resident
            pl.BlockSpec(memory_space=pltpu.MemorySpace.SMEM),  # b3 scalar in SMEM
        ],
        out_specs=pl.BlockSpec((1, tb), lambda i: (0, i)),      # lane-dense output row
        compiler_params=pltpu.CompilerParams(
            dimension_semantics=("parallel",),   # shard batch tiles across TCs (v7x)
            vmem_limit_bytes=vmem_limit_bytes,
        ),
        cost_estimate=cost,
    )(x, w1_p, b1_p, w2_p, b2_p, w3_row, b3_s)
    # (1, batch) -> (batch, 1) keeps the same linear element order: metadata-only.
    return out.reshape(batch, 1)


def init_params(key, n_features, n_neurons):
    """Deterministic parameter init (shapes match the nn.Linear layers in Net)."""
    k1, k2, k3, k4, k5, k6 = jax.random.split(key, 6)
    # Stored as (in, out) — i.e. the transpose of torch's (out, in) weight.
    w1 = jax.random.normal(k1, (n_features, n_neurons), jnp.float32) * 0.1
    b1 = jax.random.normal(k2, (1, n_neurons), jnp.float32) * 0.1
    w2 = jax.random.normal(k3, (n_neurons, n_neurons), jnp.float32) * 0.1
    b2 = jax.random.normal(k4, (1, n_neurons), jnp.float32) * 0.1
    w3 = jax.random.normal(k5, (n_neurons, 1), jnp.float32) * 0.1
    b3 = jax.random.normal(k6, (1, 1), jnp.float32) * 0.1
    return w1, b1, w2, b2, w3, b3


def reference_forward(x, w1, b1, w2, b2, w3, b3):
    """Plain-JAX reference mirroring the PyTorch forward."""
    h1 = jax.nn.relu(x @ w1 + b1)
    h2 = jax.nn.relu(h1 @ w2 + b2)
    return jax.nn.sigmoid(h2 @ w3 + b3)


if __name__ == "__main__":
    key = jax.random.PRNGKey(0)
    kx, kp, kx2 = jax.random.split(key, 3)

    n_features, n_neurons = 4, 32
    raw = init_params(kp, n_features, n_neurons)

    # One-time param prep (hoisted out of the forward path).
    params_f32 = prepare_params(*raw, matmul_dtype=jnp.float32)
    params_bf16 = prepare_params(*raw)           # bf16 MXU operands (default)

    # Small batch consistent with the module (single grid step).
    batch = 8
    x = jax.random.normal(kx, (batch, n_features), jnp.float32)
    ref = reference_forward(x, *raw)

    out = jax.block_until_ready(net_forward(x, params_f32))
    assert out.shape == (batch, 1)
    # 1e-3 tolerance absorbs MXU f32-decomposition differences vs XLA's matmul.
    assert jnp.allclose(out, ref, atol=1e-3, rtol=0)

    out_b = jax.block_until_ready(net_forward(x, params_bf16))
    assert jnp.allclose(out_b, ref, atol=5e-2)

    # Larger batch exercising multiple tiles plus a ragged tail tile
    # (4500 = 2 * 2048 + 404) handled by Pallas partial blocks.
    batch2 = 4500
    x2 = jax.random.normal(kx2, (batch2, n_features), jnp.float32)
    ref2 = reference_forward(x2, *raw)

    out2 = jax.block_until_ready(net_forward(x2, params_bf16, block_batch=2048))
    assert out2.shape == (batch2, 1)
    assert jnp.allclose(out2, ref2, atol=5e-2)

    out2_f32 = jax.block_until_ready(net_forward(x2, params_f32, block_batch=2048))
    assert jnp.allclose(out2_f32, ref2, atol=1e-3, rtol=0)

    print("KERNEL_OK")
</pallas_src>

<mosaic_0001>
module attributes {stable_mosaic.version = 11 : i64} {
  func.func @_mlp_kernel(%arg0: i32, %arg1: memref<8x4xf32, #tpu.memory_space<vmem>>, %arg2: memref<4x128xf32, #tpu.memory_space<vmem>>, %arg3: memref<1x128xf32, #tpu.memory_space<vmem>>, %arg4: memref<128x128xf32, #tpu.memory_space<vmem>>, %arg5: memref<1x128xf32, #tpu.memory_space<vmem>>, %arg6: memref<1x128xf32, #tpu.memory_space<vmem>>, %arg7: memref<1x1xf32, #tpu.memory_space<smem>>, %arg8: memref<1x8xf32, #tpu.memory_space<vmem>>) attributes {dimension_semantics = [#tpu.dimension_semantics<parallel>], iteration_bounds = array<i64: 1>, scalar_prefetch = 0 : i64, scratch_operands = 0 : i64, tpu.core_type = #tpu.core_type<tc>, window_params = [{transform_indices = @transform_0, window_bounds = array<i64: 8, 4>}, {pipeline_mode = #tpu.pipeline_mode<synchronous>, transform_indices = @transform_1, window_bounds = array<i64: 4, 128>}, {pipeline_mode = #tpu.pipeline_mode<synchronous>, transform_indices = @transform_2, window_bounds = array<i64: 1, 128>}, {pipeline_mode = #tpu.pipeline_mode<synchronous>, transform_indices = @transform_3, window_bounds = array<i64: 128, 128>}, {pipeline_mode = #tpu.pipeline_mode<synchronous>, transform_indices = @transform_4, window_bounds = array<i64: 1, 128>}, {pipeline_mode = #tpu.pipeline_mode<synchronous>, transform_indices = @transform_5, window_bounds = array<i64: 1, 128>}, {transform_indices = @transform_6, window_bounds = array<i64: 1, 1>}, {transform_indices = @transform_7, window_bounds = array<i64: 1, 8>}]} {
    %c0 = arith.constant 0 : index
    %c0_0 = arith.constant 0 : index
    %0 = vector.load %arg1[%c0, %c0_0] : memref<8x4xf32, #tpu.memory_space<vmem>>, vector<8x4xf32>
    %c0_1 = arith.constant 0 : index
    %c0_2 = arith.constant 0 : index
    %1 = vector.load %arg2[%c0_1, %c0_2] : memref<4x128xf32, #tpu.memory_space<vmem>>, vector<4x128xf32>
    %cst = arith.constant dense<0.000000e+00> : vector<8x128xf32>
    %2 = tpu.matmul %0, %1, %cst {dimension_numbers = #tpu.dot_dimension_numbers<[1], [0], [0], [1], [0, 0, 1, 1], [], []>} : vector<8x4xf32>, vector<4x128xf32>, vector<8x128xf32> -> vector<8x128xf32>
    %c0_3 = arith.constant 0 : index
    %c0_4 = arith.constant 0 : index
    %3 = vector.load %arg3[%c0_3, %c0_4] : memref<1x128xf32, #tpu.memory_space<vmem>>, vector<1x128xf32>
    %4 = vector.broadcast %3 : vector<1x128xf32> to vector<8x128xf32>
    %5 = arith.addf %2, %4 : vector<8x128xf32>
    %cst_5 = arith.constant 0.000000e+00 : f32
    %6 = vector.broadcast %cst_5 : f32 to vector<8x128xf32>
    %7 = arith.maximumf %5, %6 : vector<8x128xf32>
    %c0_6 = arith.constant 0 : index
    %c0_7 = arith.constant 0 : index
    %8 = vector.load %arg4[%c0_6, %c0_7] : memref<128x128xf32, #tpu.memory_space<vmem>>, vector<128x128xf32>
    %cst_8 = arith.constant dense<0.000000e+00> : vector<8x128xf32>
    %9 = tpu.matmul %7, %8, %cst_8 {dimension_numbers = #tpu.dot_dimension_numbers<[1], [0], [0], [1], [0, 0, 1, 1], [], []>} : vector<8x128xf32>, vector<128x128xf32>, vector<8x128xf32> -> vector<8x128xf32>
    %c0_9 = arith.constant 0 : index
    %c0_10 = arith.constant 0 : index
    %10 = vector.load %arg5[%c0_9, %c0_10] : memref<1x128xf32, #tpu.memory_space<vmem>>, vector<1x128xf32>
    %11 = vector.broadcast %10 : vector<1x128xf32> to vector<8x128xf32>
    %12 = arith.addf %9, %11 : vector<8x128xf32>
    %cst_11 = arith.constant 0.000000e+00 : f32
    %13 = vector.broadcast %cst_11 : f32 to vector<8x128xf32>
    %14 = arith.maximumf %12, %13 : vector<8x128xf32>
    %c0_12 = arith.constant 0 : index
    %c0_13 = arith.constant 0 : index
    %15 = vector.load %arg6[%c0_12, %c0_13] : memref<1x128xf32, #tpu.memory_space<vmem>>, vector<1x128xf32>
    %cst_14 = arith.constant dense<0.000000e+00> : vector<1x8xf32>
    %16 = tpu.matmul %15, %14, %cst_14 {dimension_numbers = #tpu.dot_dimension_numbers<[1], [1], [0], [0], [0, 0, 1, 0], [], []>} : vector<1x128xf32>, vector<8x128xf32>, vector<1x8xf32> -> vector<1x8xf32>
    %c0_15 = arith.constant 0 : index
    %c0_16 = arith.constant 0 : index
    %17 = memref.load %arg7[%c0_15, %c0_16] : memref<1x1xf32, #tpu.memory_space<smem>>
    %18 = vector.broadcast %17 : f32 to vector<1x8xf32>
    %19 = arith.addf %16, %18 : vector<1x8xf32>
    %20 = arith.negf %19 : vector<1x8xf32>
    %21 = math.exp %20 : vector<1x8xf32>
    %cst_17 = arith.constant 1.000000e+00 : f32
    %22 = vector.broadcast %cst_17 : f32 to vector<1x8xf32>
    %23 = arith.addf %22, %21 : vector<1x8xf32>
    %24 = arith.divf %22, %23 : vector<1x8xf32>
    %c0_18 = arith.constant 0 : index
    %c0_19 = arith.constant 0 : index
    %25 = vector.load %arg8[%c0_18, %c0_19] : memref<1x8xf32, #tpu.memory_space<vmem>>, vector<1x8xf32>
    tpu.vector_store %arg8[%c0_18, %c0_19], %24 {strides = array<i32>} : memref<1x8xf32, #tpu.memory_space<vmem>>, vector<1x8xf32>,
    return
  }
  func.func @transform_0(%arg0: i32) -> (i32, i32) {
    %c0_i32 = arith.constant 0 : i32
    %c0_i32_0 = arith.constant 0 : i32
    return %arg0, %c0_i32 : i32, i32
  }
  func.func @transform_1(%arg0: i32) -> (i32, i32) {
    %c0_i32 = arith.constant 0 : i32
    %c0_i32_0 = arith.constant 0 : i32
    %c0_i32_1 = arith.constant 0 : i32
    return %c0_i32, %c0_i32_0 : i32, i32
  }
  func.func @transform_2(%arg0: i32) -> (i32, i32) {
    %c0_i32 = arith.constant 0 : i32
    %c0_i32_0 = arith.constant 0 : i32
    %c0_i32_1 = arith.constant 0 : i32
    return %c0_i32, %c0_i32_0 : i32, i32
  }
  func.func @transform_3(%arg0: i32) -> (i32, i32) {
    %c0_i32 = arith.constant 0 : i32
    %c0_i32_0 = arith.constant 0 : i32
    %c0_i32_1 = arith.constant 0 : i32
    return %c0_i32, %c0_i32_0 : i32, i32
  }
  func.func @transform_4(%arg0: i32) -> (i32, i32) {
    %c0_i32 = arith.constant 0 : i32
    %c0_i32_0 = arith.constant 0 : i32
    %c0_i32_1 = arith.constant 0 : i32
    return %c0_i32, %c0_i32_0 : i32, i32
  }
  func.func @transform_5(%arg0: i32) -> (i32, i32) {
    %c0_i32 = arith.constant 0 : i32
    %c0_i32_0 = arith.constant 0 : i32
    %c0_i32_1 = arith.constant 0 : i32
    return %c0_i32, %c0_i32_0 : i32, i32
  }
  func.func @transform_6(%arg0: i32) -> (i32, i32) {
    %c0_i32 = arith.constant 0 : i32
    %c0_i32_0 = arith.constant 0 : i32
    %c0_i32_1 = arith.constant 0 : i32
    return %c0_i32, %c0_i32_0 : i32, i32
  }
  func.func @transform_7(%arg0: i32) -> (i32, i32) {
    %c0_i32 = arith.constant 0 : i32
    %c0_i32_0 = arith.constant 0 : i32
    return %c0_i32, %arg0 : i32, i32
  }
}

</mosaic_0001>

<bundles_post_ra>
// kernel: tpu_custom_call.1
= control target key start
LH: loop header
LB: loop body
LE: loop exit
PB: predicated region body
PF: predicated region fallthrough
CT: control target
= control target key end

     0   :  { %13 = vsyncpa [#allocation4], 0  ;;  %s566_s0 = inlined_call_operand.vmem [shape: f32[8,4], index: 0, kind: input, shape index: {}]   ;;  %s567_s1 = inlined_call_operand.vmem [shape: f32[4,128], index: 1, kind: input, shape index: {}]   ;;  %s568_s2 = inlined_call_operand.vmem [shape: f32[1,128], index: 2, kind: input, shape index: {}]   ;;  %s569_s3 = inlined_call_operand.hbm [shape: f32[128,128], index: 3, kind: input, shape index: {}]   ;;  %s570_s4 = inlined_call_operand.vmem [shape: f32[1,128], index: 4, kind: input, shape index: {}]   ;;  %s571_s5 = inlined_call_operand.vmem [shape: f32[1,128], index: 5, kind: input, shape index: {}]   ;;  %s572_s6 = inlined_call_operand.<no memory space> [shape: f32[1,1], index: 6, kind: input, shape index: {}]   ;;  %s573_s7 = inlined_call_operand.hbm [shape: f32[1,8], index: 7, kind: output, shape index: {}]  }
   0x1   :  { %14 = vsyncpa [#allocation5], 0  ;;  %s474_s24 = smov [#allocation3]   ;;  %s426_s28 = scalar_lea.hbm %s569_s3, 2048 }
   0x2   :  { %s26_s25 = sshll.u32 %s474_s24, 4  ;;  %p427_p0 = scmp.ne.s32.totalorder %s569_s3, %s426_s28  ;;  %s27_s25 = int_to_ptr.vmem [resolvable:$true] %s26_s25 }
   0x3   :  { %p430_p1 = scmp.lt.u32.totalorder %s426_s28, %s569_s3 }
   0x5   :  { %p432_p2 = pnand %p430_p1, %p427_p0 }
   0x7   :  { %435 = shalt.err (!%p432_p2)
}
   0x8   :  { %s436_s10 = scalar_lea.vmem %s27_s25, 2048  ;;  %p441_p4 = scmp.lt.s32.totalorder %s27_s25, %s27_s25 }
   0x9   :  { %p437_p3 = scmp.ne.s32.totalorder %s27_s25, %s436_s10  ;;  %p442_p5 = scmp.lt.s32.totalorder %s436_s10, %s436_s10 }
   0xb   :  { %p443_p6 = por %p442_p5, %p441_p4 }
   0xd   :  { %p444_p7 = pnand %p443_p6, %p437_p3 }
   0xf   :  { %447 = shalt.err (!%p444_p7)
}
  0x10   :  { %s475_s11 = smov 128   ;;  %s476_s12 = smov 8  }
  0x11   :  { %32 = dma.hbm_to_vmem [thread:$0]  %s569_s3, 2048, %s27_s25, [#allocation4], %s475_s11, %s475_s11, %s476_s12  }
  0x12   :  { %470 = dma.done.wait [#allocation4], 2048  }
  0x13   :  { %471 = vsyncadd [#allocation4], 4294965248  ;;  %v477_v0 = vmov 0.0   ;;  %vm478_vm0 = vmmov 0   ;;  %v479_v1 = vmov 0.0|0.0   ;;  %vm55_vm1 = vcmask 1043456  }
  0x14   :  { %346 = vmatprep.subr.mxu0 %v477_v0  ;;  %348 = vmatprep.mubr.msk.f32.mxu0 %vm478_vm0, %v477_v0  ;;  %vm51_vm2 = vcmask 31744   ;;  %v43_v2 = vld [vmem:[%s567_s1] sm:$0xf]  ;;  %v131_v5 = vld [vmem:[#allocation3 + $0x8] sm:$0xff]  ;;  %v132_v6 = vld [vmem:[#allocation3 + $0x10] sm:$0xff]  ;;  %v226_v39 = vstv %s572_s6  ;;  %vm303_vm3 = vcmask 57344  }
  0x15   :  { %391 = vmatprep.subr.bf16.mxu1 %v479_v1  ;;  %383 = vmatprep.mubr.msk.f32.mxu1 %vm478_vm0, %v477_v0  ;;  %v42_v3 = vld [vmem:[%s566_s0] sm:$0xff]  ;;  %v133_v7 = vld [vmem:[#allocation3 + $0x18] sm:$0xff]  ;;  %v135_v11 = vld [vmem:[#allocation3 + $0x28] sm:$0xff] }
  0x16   :  { %v130_v4 = vld [vmem:[#allocation3] sm:$0xff]  ;;  %347 = vmatpush3.msk.msra.mxu0 %vm55_vm1, %v43_v2  ;;  %v395_v9 = vpack.c.bf16 %v133_v7, %v132_v6  ;;  %v136_v13 = vld [vmem:[#allocation3 + $0x30] sm:$0xff]  ;;  %v137_v14 = vld [vmem:[#allocation3 + $0x38] sm:$0xff] }
  0x17   :  { %349 = vmatmul.mubr.msk.f32.vlgmr.msra.gmra.mrb[0].mxu0 %vm51_vm2, %v42_v3  ;;  %v392_v8 = vpack.c.bf16 %v131_v5, %v130_v4  ;;  %386 = vmatprep.subr.mxu0 %v477_v0  ;;  %v134_v10 = vld [vmem:[#allocation3 + $0x20] sm:$0xff]  ;;  %v401_v15 = vpack.c.bf16 %v137_v14, %v136_v13  ;;  %v139_v17 = vld [vmem:[#allocation3 + $0x48] sm:$0xff]  ;;  %v140_v19 = vld [vmem:[#allocation3 + $0x50] sm:$0xff] }
  0x18   :  { %388 = vmatprep.mubr.msk.f32.mxu0 %vm478_vm0, %v477_v0  ;;  %v398_v12 = vpack.c.bf16 %v135_v11, %v134_v10  ;;  %v138_v16 = vld [vmem:[#allocation3 + $0x40] sm:$0xff]  ;;  %v141_v20 = vld [vmem:[#allocation3 + $0x58] sm:$0xff]  ;;  %v143_v23 = vld [vmem:[#allocation3 + $0x68] sm:$0xff] }
  0x19   :  { %393 = vmatpush3.bf16.msra.mxu1 %v392_v8  ;;  %v404_v18 = vpack.c.bf16 %v139_v17, %v138_v16  ;;  %v407_v21 = vpack.c.bf16 %v141_v20, %v140_v19  ;;  %v142_v22 = vld [vmem:[#allocation3 + $0x60] sm:$0xff]  ;;  %v144_v25 = vld [vmem:[#allocation3 + $0x70] sm:$0xff]  ;;  %v145_v26 = vld [vmem:[#allocation3 + $0x78] sm:$0xff] }
  0x1a   :  { %394 = vmatprep.subr.bf16.mxu1 %v479_v1  ;;  %v410_v24 = vpack.c.bf16 %v143_v23, %v142_v22  ;;  %v413_v27 = vpack.c.bf16 %v145_v26, %v144_v25  ;;  %v320_v28 = vld [vmem:[%s568_s2] ss:$0 sm:$0xff] }
  0x1b   :  { %v323_v33 = vld [vmem:[%s570_s4] ss:$0 sm:$0xff]  ;;  %s480_s4 = smov [#allocation6]  }
  0x1c   :  { %v224_v38 = vld [vmem:[%s571_s5] sm:$0x1]  ;;  %s311_s23 = sshll.u32 %s480_s4, 4  ;;  %s312_s23 = int_to_ptr.vmem [resolvable:$true] %s311_s23 }
  0x1d   :  { %396 = vmatpush3.bf16.msra.mxu1 %v395_v9  ;;  %s448_s5 = scalar_lea.vmem %s312_s23, 16  ;;  %s452_s24 = scalar_lea.vmem %s312_s23, 32 }
  0x1e   :  { %397 = vmatprep.subr.bf16.mxu1 %v479_v1  ;;  %p449_p8 = scmp.ne.s32.totalorder %s312_s23, %s448_s5  ;;  %p453_p9 = scmp.lt.s32.totalorder %s312_s23, %s312_s23 }
  0x1f   :  { %p454_p10 = scmp.lt.s32.totalorder %s452_s24, %s448_s5 }
  0x21   :  { %399 = vmatpush3.bf16.msra.mxu1 %v398_v12  ;;  %p455_p11 = por %p454_p10, %p453_p9 }
  0x22   :  { %400 = vmatprep.subr.bf16.mxu1 %v479_v1 }
  0x23   :  { %p456_p12 = pnand %p455_p11, %p449_p8 }
  0x25   :  { %402 = vmatpush3.bf16.msra.mxu1 %v401_v15 }
  0x26   :  { %403 = vmatprep.subr.bf16.mxu1 %v479_v1 }
  0x29   :  { %405 = vmatpush3.bf16.msra.mxu1 %v404_v18 }
  0x2a   :  { %406 = vmatprep.subr.bf16.mxu1 %v479_v1 }
  0x2d   :  { %408 = vmatpush3.bf16.msra.mxu1 %v407_v21 }
  0x2e   :  { %409 = vmatprep.subr.bf16.mxu1 %v479_v1 }
  0x31   :  { %411 = vmatpush3.bf16.msra.mxu1 %v410_v24 }
  0x32   :  { %412 = vmatprep.subr.bf16.mxu1 %v479_v1 }
  0x35   :  { %414 = vmatpush3.bf16.msra.mxu1 %v413_v27 }
  0xea   :  { %v125_v29 = vpop.f32.mrb[0].mxu0 }
  0xeb   :  { %v126_v30 = vadd.f32 %v320_v28, %v125_v29  ;;  %v350_v31 = vpop.f32.mrb[1].mxu0 }
  0xed   :  { %v129_v32 = vmax.f32 %v126_v30, 0.0 }
  0xef   :  { %384 = vmatmul.mubr.f32.vlgmr.msra.gmra.mrb[0].mxu1 %v129_v32 }
 0x1c2   :  { %v219_v34 = vpop.f32.mrb[0].mxu1 }
 0x1c3   :  { %v220_v35 = vadd.f32 %v323_v33, %v219_v34  ;;  %v385_v36 = vpop.f32.mrb[1].mxu1 }
 0x1c5   :  { %v223_v37 = vmax.f32 %v220_v35, 0.0 }
 0x1c7   :  { %387 = vmatpush3.xpose.msra.mxu0 %v223_v37 }
 0x1ca   :  { %389 = vmatmul.mubr.f32.vlgmr.msra.gmra.mrb[2].mxu0 %v224_v38 }
 0x29d   :  { %v293_v40 = vpop.f32.mrb[2].mxu0 }
 0x29e   :  { %v294_v41 = vadd.f32 %v293_v40, %v226_v39  ;;  %v390_v42 = vpop.f32.mrb[3].mxu0 }
 0x2a0   :  { %v324_v43 = vmul.f32 -1.442695, %v294_v41 }
 0x2a2   :  { %422 = vpow2.f32 %v324_v43 }
 0x2ac   :  { %v423_v44 = vpop.eup %422 }
 0x2ad   :  { %v300_v45 = vadd.f32 1.0, %v423_v44 }
 0x2af   :  { %424 = vrcp.f32 %v300_v45 }
 0x2b9   :  { %v425_v46 = vpop.eup %424 }
 0x2ba   :  { %304 = vst.msk [vmem:[#allocation6] sm:$0x1] %vm303_vm3, %v425_v46 }
 0x2bb   :  { %459 = shalt.err (!%p456_p12)
}
 0x2bc   :  { %s460_s26 = scalar_lea.hbm %s573_s7, 16 }
 0x2bd   :  { %p461_p13 = scmp.ne.s32.totalorder %s573_s7, %s460_s26  ;;  %p464_p0 = scmp.lt.u32.totalorder %s460_s26, %s573_s7 }
 0x2bf   :  { %p466_p1 = pnand %p464_p0, %p461_p13 }
 0x2c1   :  { %469 = shalt.err (!%p466_p1)
}
 0x2c2   :  { %314 = dma.vmem_to_hbm [thread:$0]  %s312_s23, 16, %s573_s7, [#allocation5]  }
 0x2c3   :  { %472 = dma.done.wait [#allocation5], 16  }
 0x2c4   :  { %473 = vsyncadd [#allocation5], 4294967280 }
 0x2c5   :  { %318 = vsyncpa [#allocation4], 1 }
 0x2c6   :  { %319 = vsyncpa [#allocation5], 1 }

</bundles_post_ra>
